<compile_context>
chip_gen: v7x
topology: tpu7x:2x2x1
jax: 0.10.0
libtpu: 0.0.40
codegen_flags: <defaults>
</compile_context>

<pallas_src>
import jax
import jax.numpy as jnp
from jax import lax
from jax.experimental import pallas as pl
from jax.experimental.pallas import tpu as pltpu


# ---------------------------------------------------------------------------
# Pallas kernel: matmul + bias (hoisted input projection), row-tiled grid.
# ---------------------------------------------------------------------------
def _matmul_bias_kernel(x_ref, w_ref, b_ref, o_ref):
    o_ref[...] = (jnp.dot(x_ref[...], w_ref[...],
                          preferred_element_type=jnp.float32) + b_ref[...])


def _matmul_bias(x, w, b):
    """x: (M, K), w: (K, N), b: (1, N) -> (M, N) in f32."""
    M, K = x.shape
    N = w.shape[1]
    # Largest row tile (multiple of 8) that evenly divides M, else one block.
    tm = M
    for cand in (512, 256, 128, 64, 32, 16, 8):
        if M % cand == 0:
            tm = cand
            break
    # TODO(synk): also tile K/N with a reduction axis for very large layers.
    return pl.pallas_call(
        _matmul_bias_kernel,
        out_shape=jax.ShapeDtypeStruct((M, N), jnp.float32),
        grid_spec=pltpu.PrefetchScalarGridSpec(
            num_scalar_prefetch=0,
            grid=(M // tm,),
            in_specs=[pl.BlockSpec((tm, K), lambda i: (i, 0)),
                      pl.BlockSpec((K, N), lambda i: (0, 0)),
                      pl.BlockSpec((1, N), lambda i: (0, 0))],
            out_specs=pl.BlockSpec((tm, N), lambda i: (i, 0))),
        compiler_params=pltpu.CompilerParams(
            dimension_semantics=("parallel",)),
    )(x, w, b)


# ---------------------------------------------------------------------------
# Pallas kernel: fused bidirectional LSTM recurrence for one layer.
# Inputs:
#   gx_ref  : (T, B, 8H)  precomputed x @ Wih^T + (b_ih + b_hh), both directions
#   whh_ref : (2H, 8H)    block-diagonal recurrent weights (fwd rows 0:H,
#                          bwd rows H:2H), gate columns [i,f,o,g] x [fwd,bwd]
#   len_ref : (B, 1) int32 sequence lengths
# Outputs:
#   out_ref   : (T, B, 2H)  [fwd | bwd] outputs, zero at padding
#   c_fin_ref : (B, 2H)     final cell state [c_fwd | c_bwd]
# ---------------------------------------------------------------------------
def _bidir_lstm_kernel(gx_ref, whh_ref, len_ref, out_ref, c_fin_ref):
    T, B, G = gx_ref.shape
    H = G // 8
    H2 = 2 * H

    whh = whh_ref[...]                 # hoisted: loaded once, reused every step
    lengths = len_ref[...]             # (B, 1) int32

    # Loop-invariant column-index helpers (hoisted out of the fori_loop body).
    col_g = lax.broadcasted_iota(jnp.int32, (1, G), 1)
    is_fwd_g = ((col_g // H) % 2) == 0          # fwd/bwd interleaved per gate
    col_s = lax.broadcasted_iota(jnp.int32, (1, H2), 1)
    is_fwd_s = col_s < H                        # state layout [fwd | bwd]

    def step(t, carry):
        h, c = carry                            # (B, 2H) each
        tb = T - 1 - t                          # reverse-direction time index

        # Fwd columns read the projection at time t, bwd columns at time tb.
        gx_merged = jnp.where(is_fwd_g, gx_ref[t], gx_ref[tb])           # (B, 8H)
        gates = gx_merged + jnp.dot(h, whh,
                                    preferred_element_type=jnp.float32)  # (B, 8H)

        # Gate column order i, f, o, g (directions interleaved per gate) ->
        # all sigmoid gates are one contiguous 6H slab, tanh gate trails.
        sig = jax.nn.sigmoid(gates[:, 0:6 * H])      # [i_f|i_b|f_f|f_b|o_f|o_b]
        i_cat = sig[:, 0:H2]
        f_cat = sig[:, H2:2 * H2]
        o_cat = sig[:, 2 * H2:3 * H2]
        g_cat = jnp.tanh(gates[:, 6 * H:8 * H])

        c_new = f_cat * c + i_cat * g_cat
        h_new = o_cat * jnp.tanh(c_new)

        # Packed-sequence semantics: state advances only on valid timesteps,
        # padded positions emit zeros (pad_packed_sequence padding_value=0).
        t_col = jnp.where(is_fwd_s, t, tb)                       # (1, 2H)
        mask = (t_col < lengths).astype(jnp.float32)             # (B, 2H)

        h_masked = mask * h_new
        out_ref[t, :, 0:H] = h_masked[:, 0:H]                    # fwd half at t
        out_ref[tb, :, H:H2] = h_masked[:, H:H2]                 # bwd half at tb

        h_next = h_masked + (1.0 - mask) * h
        c_next = mask * c_new + (1.0 - mask) * c
        return h_next, c_next

    zeros = jnp.zeros((B, H2), jnp.float32)
    _, c_fin = lax.fori_loop(0, T, step, (zeros, zeros))
    c_fin_ref[...] = c_fin


def _bidir_lstm_layer(x, lengths_col, w_in_cat, b_in_cat, whh_bd):
    """x: (T, B, Din) -> (out (T, B, 2H), c_final (B, 2H))."""
    T, B, Din = x.shape
    H = whh_bd.shape[0] // 2

    # Hoisted input projection for both directions: one MXU-shaped matmul.
    gx = _matmul_bias(x.reshape(T * B, Din), w_in_cat, b_in_cat)
    gx = gx.reshape(T, B, 8 * H)

    # TODO(synk): for very long sequences, chunk the time axis (keeping the
    # fori_loop inside each chunk) instead of holding all T steps in VMEM.
    out, c_fin = pl.pallas_call(
        _bidir_lstm_kernel,
        out_shape=(jax.ShapeDtypeStruct((T, B, 2 * H), jnp.float32),
                   jax.ShapeDtypeStruct((B, 2 * H), jnp.float32)),
    )(gx, whh_bd, lengths_col)
    return out, c_fin


# ---------------------------------------------------------------------------
# Pallas kernel: transform_hidden Linear(2H -> H); returns (linear, tanh(linear)).
# ---------------------------------------------------------------------------
def _linear_tanh_kernel(x_ref, w_ref, b_ref, cell_ref, hid_ref):
    y = jnp.dot(x_ref[...], w_ref[...],
                preferred_element_type=jnp.float32) + b_ref[...]
    cell_ref[...] = y
    hid_ref[...] = jnp.tanh(y)


# ---------------------------------------------------------------------------
# Parameter init (PyTorch-like raw shapes) + one-time packing for the kernels.
# ---------------------------------------------------------------------------
def init_params(key, vocab, embed, hidden, num_layers):
    params = {}
    key, k_emb = jax.random.split(key)
    params["embedding"] = jax.random.normal(k_emb, (vocab, embed), jnp.float32)

    bound = 1.0 / (hidden ** 0.5)
    lstm = []
    for layer in range(num_layers):
        din = embed if layer == 0 else 2 * hidden
        dirs = []
        for _direction in range(2):
            key, k1, k2, k3, k4 = jax.random.split(key, 5)
            wih = jax.random.uniform(k1, (4 * hidden, din), jnp.float32, -bound, bound)
            whh = jax.random.uniform(k2, (4 * hidden, hidden), jnp.float32, -bound, bound)
            bih = jax.random.uniform(k3, (4 * hidden,), jnp.float32, -bound, bound)
            bhh = jax.random.uniform(k4, (4 * hidden,), jnp.float32, -bound, bound)
            dirs.append((wih, whh, bih, bhh))
        lstm.append(dirs)
    params["lstm"] = lstm

    tb = 1.0 / ((2 * hidden) ** 0.5)
    key, kw, kb = jax.random.split(key, 3)
    params["transform_w"] = jax.random.uniform(kw, (hidden, 2 * hidden), jnp.float32, -tb, tb)
    params["transform_b"] = jax.random.uniform(kb, (hidden,), jnp.float32, -tb, tb)
    return params


def pack_params(raw, hidden, num_layers):
    """One-time repacking: transpose weights, fuse biases, reorder gates to
    [i, f, o, g] and interleave directions per gate."""
    H = hidden
    # Source (PyTorch) gate row order is i, f, g, o -> destination slot 0,1,3,2.
    dest_slot = (0, 1, 3, 2)
    packed = {"embedding": raw["embedding"]}
    lstm_packed = []
    for layer in range(num_layers):
        dirs = raw["lstm"][layer]                 # [(wih, whh, bih, bhh) fwd, bwd]
        din = dirs[0][0].shape[1]
        w_in = jnp.zeros((din, 8 * H), jnp.float32)
        b_in = jnp.zeros((1, 8 * H), jnp.float32)
        whh_bd = jnp.zeros((2 * H, 8 * H), jnp.float32)
        for k in range(4):                        # source gates i, f, g, o
            s = dest_slot[k]
            for d in range(2):                    # 0 = fwd, 1 = bwd
                wih, whh, bih, bhh = dirs[d]
                m = 2 * s + d
                cols = slice(m * H, (m + 1) * H)
                rows = slice(k * H, (k + 1) * H)
                w_in = w_in.at[:, cols].set(jnp.transpose(wih[rows, :]))
                b_in = b_in.at[:, cols].set((bih[rows] + bhh[rows])[None, :])
                whh_bd = whh_bd.at[d * H:(d + 1) * H, cols].set(
                    jnp.transpose(whh[rows, :]))
        lstm_packed.append((w_in, b_in, whh_bd))
    packed["lstm_packed"] = lstm_packed
    packed["transform_wT"] = jnp.transpose(raw["transform_w"])   # (2H, H)
    packed["transform_b2d"] = raw["transform_b"][None, :]        # (1, H)
    return packed


# ---------------------------------------------------------------------------
# Forward pass (bidirectional branch of EncoderRNN.forward).
# ---------------------------------------------------------------------------
def encoder_rnn_forward(tokens, lengths, params, *, hidden, num_layers):
    T, B = tokens.shape
    # Embedding lookup: gather done in plain JAX glue.
    emb = jnp.take(params["embedding"], tokens, axis=0)          # (T, B, E)
    lengths_col = lengths.astype(jnp.int32).reshape(B, 1)        # (B, 1)

    x = emb
    c_finals = []
    for layer in range(num_layers):
        w_in, b_in, whh_bd = params["lstm_packed"][layer]
        x, c_fin = _bidir_lstm_layer(x, lengths_col, w_in, b_in, whh_bd)
        c_finals.append(c_fin)                                   # (B, 2H)
        # TODO(synk): inter-layer LSTM dropout omitted (deterministic / eval-mode forward).

    output = x                                                   # (T, B, 2H)

    # c_finals[l] already equals torch.cat((c_n[2l], c_n[2l+1]), dim=1).
    # (The concatenated h from the reference is dead code — only c is used.)
    c_cat = jnp.stack(c_finals, axis=0)                          # (L, B, 2H)
    LB = num_layers * B
    c_flat = c_cat.reshape(LB, 2 * hidden)
    cell_flat, hid_flat = pl.pallas_call(
        _linear_tanh_kernel,
        out_shape=(jax.ShapeDtypeStruct((LB, hidden), jnp.float32),
                   jax.ShapeDtypeStruct((LB, hidden), jnp.float32)),
    )(c_flat, params["transform_wT"], params["transform_b2d"])

    cell_final = cell_flat.reshape(num_layers, B, hidden)
    hidden_final = hid_flat.reshape(num_layers, B, hidden)       # = tanh(cell_final)
    return output, (hidden_final, cell_final)


if __name__ == "__main__":
    vocab_size, embed_size, hidden_size, num_layers = 50, 32, 32, 2
    T, B = 8, 4

    key = jax.random.PRNGKey(0)
    k_params, k_tok = jax.random.split(key)
    raw_params = init_params(k_params, vocab_size, embed_size, hidden_size, num_layers)
    params = pack_params(raw_params, hidden_size, num_layers)

    tokens = jax.random.randint(k_tok, (T, B), 0, vocab_size, dtype=jnp.int32)
    # pack_padded_sequence requires descending lengths.
    input_lengths = jnp.array([8, 7, 5, 3], dtype=jnp.int32)

    output, (hidden_final, cell_final) = encoder_rnn_forward(
        tokens, input_lengths, params, hidden=hidden_size, num_layers=num_layers)
    jax.block_until_ready((output, hidden_final, cell_final))

    assert output.shape == (T, B, 2 * hidden_size)
    assert hidden_final.shape == (num_layers, B, hidden_size)
    assert cell_final.shape == (num_layers, B, hidden_size)
    print("KERNEL_OK")
</pallas_src>

<mosaic_0001>
module attributes {stable_mosaic.version = 11 : i64} {
  func.func @_matmul_bias_kernel(%arg0: i32, %arg1: memref<32x32xf32, #tpu.memory_space<vmem>>, %arg2: memref<32x256xf32, #tpu.memory_space<vmem>>, %arg3: memref<1x256xf32, #tpu.memory_space<vmem>>, %arg4: memref<32x256xf32, #tpu.memory_space<vmem>>) attributes {dimension_semantics = [#tpu.dimension_semantics<parallel>], iteration_bounds = array<i64: 1>, scalar_prefetch = 0 : i64, scratch_operands = 0 : i64, tpu.core_type = #tpu.core_type<tc>, window_params = [{transform_indices = @transform_0, window_bounds = array<i64: 32, 32>}, {pipeline_mode = #tpu.pipeline_mode<synchronous>, transform_indices = @transform_1, window_bounds = array<i64: 32, 256>}, {pipeline_mode = #tpu.pipeline_mode<synchronous>, transform_indices = @transform_2, window_bounds = array<i64: 1, 256>}, {transform_indices = @transform_3, window_bounds = array<i64: 32, 256>}]} {
    %c0 = arith.constant 0 : index
    %c0_0 = arith.constant 0 : index
    %0 = vector.load %arg1[%c0, %c0_0] : memref<32x32xf32, #tpu.memory_space<vmem>>, vector<32x32xf32>
    %c0_1 = arith.constant 0 : index
    %c0_2 = arith.constant 0 : index
    %1 = vector.load %arg2[%c0_1, %c0_2] : memref<32x256xf32, #tpu.memory_space<vmem>>, vector<32x256xf32>
    %cst = arith.constant dense<0.000000e+00> : vector<32x256xf32>
    %2 = tpu.matmul %0, %1, %cst {dimension_numbers = #tpu.dot_dimension_numbers<[1], [0], [0], [1], [0, 0, 1, 1], [], []>} : vector<32x32xf32>, vector<32x256xf32>, vector<32x256xf32> -> vector<32x256xf32>
    %c0_3 = arith.constant 0 : index
    %c0_4 = arith.constant 0 : index
    %3 = vector.load %arg3[%c0_3, %c0_4] : memref<1x256xf32, #tpu.memory_space<vmem>>, vector<1x256xf32>
    %4 = vector.broadcast %3 : vector<1x256xf32> to vector<32x256xf32>
    %5 = arith.addf %2, %4 : vector<32x256xf32>
    %c0_5 = arith.constant 0 : index
    %c0_6 = arith.constant 0 : index
    %6 = vector.load %arg4[%c0_5, %c0_6] : memref<32x256xf32, #tpu.memory_space<vmem>>, vector<32x256xf32>
    tpu.vector_store %arg4[%c0_5, %c0_6], %5 {strides = array<i32>} : memref<32x256xf32, #tpu.memory_space<vmem>>, vector<32x256xf32>,
    return
  }
  func.func @transform_0(%arg0: i32) -> (i32, i32) {
    %c0_i32 = arith.constant 0 : i32
    %c0_i32_0 = arith.constant 0 : i32
    return %arg0, %c0_i32 : i32, i32
  }
  func.func @transform_1(%arg0: i32) -> (i32, i32) {
    %c0_i32 = arith.constant 0 : i32
    %c0_i32_0 = arith.constant 0 : i32
    %c0_i32_1 = arith.constant 0 : i32
    return %c0_i32, %c0_i32_0 : i32, i32
  }
  func.func @transform_2(%arg0: i32) -> (i32, i32) {
    %c0_i32 = arith.constant 0 : i32
    %c0_i32_0 = arith.constant 0 : i32
    %c0_i32_1 = arith.constant 0 : i32
    return %c0_i32, %c0_i32_0 : i32, i32
  }
  func.func @transform_3(%arg0: i32) -> (i32, i32) {
    %c0_i32 = arith.constant 0 : i32
    %c0_i32_0 = arith.constant 0 : i32
    return %arg0, %c0_i32 : i32, i32
  }
}

</mosaic_0001>

<bundles_post_ra>
// kernel: tpu_custom_call.1
= control target key start
LH: loop header
LB: loop body
LE: loop exit
PB: predicated region body
PF: predicated region fallthrough
CT: control target
= control target key end

     0   :  { %8 = vsyncpa [#allocation3], 0  ;;  %s364_s0 = inlined_call_operand.hbm [shape: f32[32,32], index: 0, kind: input, shape index: {}]   ;;  %s365_s1 = inlined_call_operand.hbm [shape: f32[32,256], index: 1, kind: input, shape index: {}]   ;;  %s366_s2 = inlined_call_operand.vmem [shape: f32[1,256], index: 2, kind: input, shape index: {}]   ;;  %s367_s3 = inlined_call_operand.hbm [shape: f32[32,256], index: 3, kind: output, shape index: {}]  }
   0x1   :  { %9 = vsyncpa [#allocation6], 0 }
   0x2   :  { %10 = vsyncpa [#allocation4], 0  ;;  %s291_s12 = smov [#allocation2]   ;;  %s219_s16 = scalar_lea.hbm %s364_s0, 512 }
   0x3   :  { %s16_s13 = sshll.u32 %s291_s12, 4  ;;  %p220_p0 = scmp.ne.s32.totalorder %s364_s0, %s219_s16  ;;  %s17_s13 = int_to_ptr.vmem [resolvable:$true] %s16_s13 }
   0x4   :  { %p223_p1 = scmp.lt.u32.totalorder %s219_s16, %s364_s0 }
   0x6   :  { %p225_p2 = pnand %p223_p1, %p220_p0 }
   0x8   :  { %228 = shalt.err (!%p225_p2)
}
   0x9   :  { %s229_s21 = scalar_lea.vmem %s17_s13, 512  ;;  %p234_p4 = scmp.lt.s32.totalorder %s17_s13, %s17_s13 }
   0xa   :  { %p230_p3 = scmp.ne.s32.totalorder %s17_s13, %s229_s21  ;;  %p235_p5 = scmp.lt.s32.totalorder %s229_s21, %s229_s21 }
   0xc   :  { %p236_p6 = por %p235_p5, %p234_p4 }
   0xe   :  { %p237_p7 = pnand %p236_p6, %p230_p3 }
  0x10   :  { %240 = shalt.err (!%p237_p7)
}
  0x11   :  { %s292_s22 = smov 128   ;;  %s293_s23 = smov 8  }
  0x12   :  { %22 = dma.hbm_to_vmem [thread:$0]  %s364_s0, 512, %s17_s13, [#allocation3], %s292_s22, %s292_s22, %s293_s23  }
  0x13   :  { %s294_s26 = smov [#allocation5]   ;;  %s241_s30 = scalar_lea.hbm %s365_s1, 1024 }
  0x14   :  { %s28_s27 = sshll.u32 %s294_s26, 4  ;;  %p242_p8 = scmp.ne.s32.totalorder %s365_s1, %s241_s30  ;;  %s29_s27 = int_to_ptr.vmem [resolvable:$true] %s28_s27 }
  0x15   :  { %p245_p9 = scmp.lt.u32.totalorder %s241_s30, %s365_s1 }
  0x17   :  { %p247_p10 = pnand %p245_p9, %p242_p8 }
  0x19   :  { %250 = shalt.err (!%p247_p10)
}
  0x1a   :  { %s251_s8 = scalar_lea.vmem %s29_s27, 1024  ;;  %p256_p12 = scmp.lt.s32.totalorder %s29_s27, %s29_s27 }
  0x1b   :  { %p252_p11 = scmp.ne.s32.totalorder %s29_s27, %s251_s8  ;;  %p257_p13 = scmp.lt.s32.totalorder %s251_s8, %s251_s8 }
  0x1d   :  { %p258_p0 = por %p257_p13, %p256_p12 }
  0x1f   :  { %p259_p1 = pnand %p258_p0, %p252_p11 }
  0x21   :  { %262 = shalt.err (!%p259_p1)
}
  0x22   :  { %s295_s0 = smov 256   ;;  %s296_s9 = smov 16  }
  0x23   :  { %34 = dma.hbm_to_vmem [thread:$0]  %s365_s1, 1024, %s29_s27, [#allocation6], %s295_s0, %s295_s0, %s296_s9  }
  0x24   :  { %285 = dma.done.wait [#allocation3], 512  }
  0x25   :  { %286 = vsyncadd [#allocation3], 4294966784 }
  0x26   :  { %287 = dma.done.wait [#allocation6], 1024  }
  0x27   :  { %288 = vsyncadd [#allocation6], 4294966272  ;;  %v297_v0 = vmov 0.0   ;;  %v48_v1 = vld [vmem:[#allocation5 + $0x8] sm:$0xff]  ;;  %v50_v2 = vld [vmem:[#allocation5 + $0x18] sm:$0xff]  ;;  %vm67_vm0 = vcmask 261120   ;;  %v57_v17 = vlaneseq }
  0x28   :  { %144 = vmatprep.mubr.f32.mxu0 %v297_v0  ;;  %156 = vmatprep.mubr.f32.mxu1 %v297_v0  ;;  %v47_v3 = vld [vmem:[#allocation5] sm:$0xff]  ;;  %v199_v4 = vpack.c.bf16 %v50_v2, %v48_v1  ;;  %v49_v5 = vld [vmem:[#allocation5 + $0x10] sm:$0xff]  ;;  %v52_v6 = vld [vmem:[#allocation5 + $0x28] sm:$0xff]  ;;  %s298_s13 = smov [#allocation7]  }
  0x29   :  { %v54_v7 = vld [vmem:[#allocation5 + $0x38] sm:$0xff]  ;;  %v201_v8 = vpack.c.bf16 %v49_v5, %v47_v3  ;;  %v51_v10 = vld [vmem:[#allocation5 + $0x20] sm:$0xff]  ;;  %v53_v11 = vld [vmem:[#allocation5 + $0x30] sm:$0xff]  ;;  %v58_v18 = vshrl.u32 %v57_v17, 7  ;;  %s182_s14 = sshll.u32 %s298_s13, 4  ;;  %s183_s14 = int_to_ptr.vmem [resolvable:$true] %s182_s14 }
  0x2a   :  { %v203_v9 = vpack.c.bf16 %v54_v7, %v52_v6  ;;  %200 = vmatprep.subr.bf16.mxu0 %v199_v4  ;;  %207 = vmatprep.subr.bf16.mxu1 %v199_v4  ;;  %v205_v12 = vpack.c.bf16 %v53_v11, %v51_v10  ;;  %v43_v13 = vld [vmem:[#allocation2] sm:$0xff]  ;;  %v45_v14 = vld [vmem:[#allocation2 + $0x10] sm:$0xff]  ;;  %v44_v15 = vld [vmem:[#allocation2 + $0x8] sm:$0xff]  ;;  %p268_p3 = scmp.lt.s32.totalorder %s183_s14, %s183_s14 }
  0x2b   :  { %202 = vmatpush1.bf16.msra.mxu0 %v201_v8  ;;  %209 = vmatpush1.bf16.msra.mxu1 %v201_v8  ;;  %v46_v16 = vld [vmem:[#allocation2 + $0x18] sm:$0xff]  ;;  %v59_v19 = vsub.s32 0, %v58_v18  ;;  %v55_v20 = vld [vmem:[%s366_s2] sm:$0x3]  ;;  %v63_v21 = vsub.s32 1, %v58_v18  ;;  %s263_s2 = scalar_lea.vmem %s183_s14, 1024 }
  0x2c   :  { %204 = vmatprep.subr.bf16.mxu0 %v203_v9  ;;  %208 = vmatprep.subr.bf16.mxu1 %v203_v9  ;;  %p264_p2 = scmp.ne.s32.totalorder %s183_s14, %s263_s2  ;;  %p269_p4 = scmp.lt.s32.totalorder %s263_s2, %s263_s2 }
  0x2d   :  { %v60_v22 = vrot.slane %v55_v20, %v59_v19  ;;  %v64_v23 = vrot.slane %v55_v20, %v63_v21 }
  0x2e   :  { %p270_p5 = por %p269_p4, %p268_p3 }
  0x2f   :  { %206 = vmatpush1.bf16.msra.mxu0 %v205_v12  ;;  %210 = vmatpush1.bf16.msra.mxu1 %v205_v12 }
  0x30   :  { %p271_p6 = pnand %p270_p5, %p264_p2 }
  0x32   :  { %195 = vmatmul.mubr.msk.f32.vlgmr.msra.gmra.mrb[0].mxu0 %vm67_vm0, %v43_v13  ;;  %197 = vmatmul.mubr.msk.f32.vlgmr.msra.gmra.mrb[0].mxu1 %vm67_vm0, %v45_v14 }
  0x33   :  { %150 = vmatprep.mubr.f32.mxu0 %v297_v0  ;;  %162 = vmatprep.mubr.f32.mxu1 %v297_v0 }
  0x36   :  { %196 = vmatmul.mubr.msk.f32.gmra.mrb[2].mxu0 %vm67_vm0, %v44_v15  ;;  %198 = vmatmul.mubr.msk.f32.gmra.mrb[2].mxu1 %vm67_vm0, %v46_v16 }
 0x105   :  { %v146_v24 = vpop.f32.mrb[0].mxu0  ;;  %v158_v25 = vpop.f32.mrb[0].mxu1 }
 0x106   :  { %v147_v26 = vadd.f32 %v146_v24, %v60_v22  ;;  %v159_v27 = vadd.f32 %v158_v25, %v60_v22  ;;  %v148_v28 = vpop.f32.mrb[1].mxu0  ;;  %v160_v29 = vpop.f32.mrb[1].mxu1 }
 0x107   :  { %v149_v30 = vadd.f32 %v148_v28, %v64_v23  ;;  %v161_v31 = vadd.f32 %v160_v29, %v64_v23 }
 0x108   :  { %169 = vst [vmem:[#allocation7] sm:$0xff] %v147_v26  ;;  %173 = vst [vmem:[#allocation7 + $0x20] sm:$0xff] %v159_v27 }
 0x109   :  { %170 = vst [vmem:[#allocation7 + $0x8] sm:$0xff] %v149_v30  ;;  %174 = vst [vmem:[#allocation7 + $0x28] sm:$0xff] %v161_v31  ;;  %v152_v32 = vpop.f32.mrb[2].mxu0  ;;  %v164_v33 = vpop.f32.mrb[2].mxu1 }
 0x10a   :  { %v153_v34 = vadd.f32 %v152_v32, %v60_v22  ;;  %v165_v35 = vadd.f32 %v164_v33, %v60_v22  ;;  %v154_v36 = vpop.f32.mrb[3].mxu0  ;;  %v166_v37 = vpop.f32.mrb[3].mxu1 }
 0x10b   :  { %v155_v38 = vadd.f32 %v154_v36, %v64_v23  ;;  %v167_v39 = vadd.f32 %v166_v37, %v64_v23 }
 0x10c   :  { %171 = vst [vmem:[#allocation7 + $0x10] sm:$0xff] %v153_v34  ;;  %175 = vst [vmem:[#allocation7 + $0x30] sm:$0xff] %v165_v35 }
 0x10d   :  { %172 = vst [vmem:[#allocation7 + $0x18] sm:$0xff] %v155_v38  ;;  %176 = vst [vmem:[#allocation7 + $0x38] sm:$0xff] %v167_v39 }
 0x10e   :  { %274 = shalt.err (!%p271_p6)
}
 0x10f   :  { %s275_s17 = scalar_lea.hbm %s367_s3, 1024 }
 0x110   :  { %p276_p7 = scmp.ne.s32.totalorder %s367_s3, %s275_s17  ;;  %p279_p8 = scmp.lt.u32.totalorder %s275_s17, %s367_s3 }
 0x112   :  { %p281_p9 = pnand %p279_p8, %p276_p7 }
 0x114   :  { %284 = shalt.err (!%p281_p9)
}
 0x115   :  { %188 = dma.vmem_to_hbm [thread:$0]  %s183_s14, 1024, %s367_s3, [#allocation4], %s295_s0, %s295_s0, %s296_s9  }
 0x116   :  { %289 = dma.done.wait [#allocation4], 1024  }
 0x117   :  { %290 = vsyncadd [#allocation4], 4294966272 }
 0x118   :  { %192 = vsyncpa [#allocation3], 1 }
 0x119   :  { %193 = vsyncpa [#allocation6], 1 }
 0x11a   :  { %194 = vsyncpa [#allocation4], 1 }

</bundles_post_ra>
